<compile_context>
chip_gen: v7x
topology: tpu7x:2x2x1
jax: 0.10.0
libtpu: 0.0.40
codegen_flags: <defaults>
</compile_context>

<pallas_src>
import functools

import jax
import jax.numpy as jnp
from jax.experimental import pallas as pl
from jax.experimental.pallas import tpu as pltpu


# ----------------------------- tiling helpers -----------------------------

# Safe on v7x (64 MiB VMEM) and v5e/v6e; on v6e these can be raised to ~512/512/1024.
TM_TARGET, TN_TARGET, TK_TARGET = 256, 256, 512
_VMEM_LIMIT = 48 * 1024 * 1024


def _tile(dim, target):
    """Largest tile <= target that divides dim, preferring multiples of 128.

    Never falls back to the full dimension when dim > target, so e.g. the vocab-sized
    weight block of the logit projection stays VMEM-bounded and keeps pipelining.
    TODO(synk): pad ragged dims instead of the tiny-divisor fallback for pathological sizes.
    """
    if dim <= target:
        return dim
    t = target - (target % 128)
    while t >= 128:
        if dim % t == 0:
            return t
        t -= 128
    best = 1
    for cand in range(2, target + 1):
        if dim % cand == 0:
            best = cand
    return best


# ----------------------------- linear (tiled matmul, fused epilogue) -----------------------------

def _linear_kernel(*refs, activation, has_residual, has_ln, keep_stream):
    it = iter(refs)
    x_ref = next(it)
    w_ref = next(it)
    b_ref = next(it)
    r_ref = next(it) if has_residual else None
    g_ref = next(it) if has_ln else None
    bln_ref = next(it) if has_ln else None
    o_ref = next(it) if ((not has_ln) or keep_stream) else None
    oln_ref = next(it) if has_ln else None
    acc_ref = next(it)

    k = pl.program_id(2)

    @pl.when(k == 0)
    def _():
        acc_ref[...] = jnp.zeros_like(acc_ref)

    # f32 x f32 = f32 accumulation: portable across Mosaic and interpret backends
    # (bf16 is only the HBM storage dtype).
    acc_ref[...] += jnp.dot(x_ref[...].astype(jnp.float32),
                            w_ref[...].astype(jnp.float32),
                            preferred_element_type=jnp.float32)

    @pl.when(k == pl.num_programs(2) - 1)
    def _():
        y = acc_ref[...] + b_ref[...].astype(jnp.float32)
        if activation == "relu":
            y = jnp.maximum(y, 0.0)
        if r_ref is not None:
            y = y + r_ref[...].astype(jnp.float32)
        if o_ref is not None:
            o_ref[...] = y.astype(o_ref.dtype)
        if oln_ref is not None:
            mu = jnp.mean(y, axis=-1, keepdims=True)
            var = jnp.mean(jnp.square(y - mu), axis=-1, keepdims=True)
            yn = (y - mu) * jax.lax.rsqrt(var + 1e-5)
            oln_ref[...] = (yn * g_ref[...].astype(jnp.float32)
                            + bln_ref[...].astype(jnp.float32)).astype(oln_ref.dtype)


def linear(x, w, b, *, activation=None, residual=None, out_dtype=None,
           ln=None, keep_stream=True):
    """y = act(x @ w + b) [+ residual]; optionally also LayerNorm(y) fused in the epilogue.

    x: (M, K) bf16, w: (K, N) bf16, b: (N,) f32.
    ln: optional (gamma, beta) f32 pair -> extra normalized output (requires tn = N,
        fine for N = d_model).  keep_stream controls whether the un-normalized stream
        is also written.  Returns y, (y, ln_y) or ln_y accordingly.
    """
    M, K = x.shape
    N = w.shape[1]
    out_dtype = out_dtype or x.dtype
    tm = _tile(M, TM_TARGET)
    tk = _tile(K, TK_TARGET)
    tn = N if ln is not None else _tile(N, TN_TARGET)
    grid = (M // tm, N // tn, K // tk)

    in_specs = [pl.BlockSpec((tm, tk), lambda i, j, kk: (i, kk)),
                pl.BlockSpec((tk, tn), lambda i, j, kk: (kk, j)),
                pl.BlockSpec((1, tn), lambda i, j, kk: (0, j))]
    args = [x, w, b.reshape(1, N)]
    if residual is not None:
        # TODO(synk): residual is only read in the k==last epilogue; single-buffer it
        # (pipeline_mode=pl.Buffered(1)) if VMEM gets tight on v7x with wide tn.
        in_specs.append(pl.BlockSpec((tm, tn), lambda i, j, kk: (i, j)))
        args.append(residual)
    if ln is not None:
        g, bb = ln
        in_specs += [pl.BlockSpec((1, tn), lambda i, j, kk: (0, j)),
                     pl.BlockSpec((1, tn), lambda i, j, kk: (0, j))]
        args += [g.reshape(1, N), bb.reshape(1, N)]

    out_shapes, out_specs = [], []
    if ln is None or keep_stream:
        out_shapes.append(jax.ShapeDtypeStruct((M, N), out_dtype))
        out_specs.append(pl.BlockSpec((tm, tn), lambda i, j, kk: (i, j)))
    if ln is not None:
        out_shapes.append(jax.ShapeDtypeStruct((M, N), out_dtype))
        out_specs.append(pl.BlockSpec((tm, tn), lambda i, j, kk: (i, j)))
    multi = len(out_shapes) > 1

    return pl.pallas_call(
        functools.partial(_linear_kernel, activation=activation,
                          has_residual=residual is not None,
                          has_ln=ln is not None, keep_stream=keep_stream),
        out_shape=tuple(out_shapes) if multi else out_shapes[0],
        grid=grid,
        in_specs=in_specs,
        out_specs=tuple(out_specs) if multi else out_specs[0],
        scratch_shapes=[pltpu.VMEM((tm, tn), jnp.float32)],
        compiler_params=pltpu.CompilerParams(
            dimension_semantics=("parallel", "parallel", "arbitrary"),
            vmem_limit_bytes=_VMEM_LIMIT),
    )(*args)


# ----------------------------- layer norm (standalone, embeddings only) -----------------------------

def _layernorm_kernel(x_ref, g_ref, b_ref, o_ref):
    x = x_ref[...].astype(jnp.float32)
    mu = jnp.mean(x, axis=-1, keepdims=True)
    var = jnp.mean(jnp.square(x - mu), axis=-1, keepdims=True)
    y = (x - mu) * jax.lax.rsqrt(var + 1e-5)
    o_ref[...] = (y * g_ref[...].astype(jnp.float32)
                  + b_ref[...].astype(jnp.float32)).astype(o_ref.dtype)


def layer_norm(x, g, b):
    """x: (M, D) bf16, g/b: (D,) f32 -> (M, D) bf16 (f32 math inside)."""
    M, D = x.shape
    tm = _tile(M, TM_TARGET)
    return pl.pallas_call(
        _layernorm_kernel,
        out_shape=jax.ShapeDtypeStruct((M, D), x.dtype),
        grid=(M // tm,),
        in_specs=[pl.BlockSpec((tm, D), lambda i: (i, 0)),
                  pl.BlockSpec((1, D), lambda i: (0, 0)),
                  pl.BlockSpec((1, D), lambda i: (0, 0))],
        out_specs=pl.BlockSpec((tm, D), lambda i: (i, 0)),
        compiler_params=pltpu.CompilerParams(
            dimension_semantics=("parallel",),
            vmem_limit_bytes=_VMEM_LIMIT),
    )(x, g.reshape(1, D), b.reshape(1, D))


# ----------------------------- flash-style multi-head attention -----------------------------

def _flash_mha_kernel(*refs, num_heads, scale, causal, has_mask, tq, tkv):
    if has_mask:
        q_ref, k_ref, v_ref, mask_ref, o_ref, m_sc, l_sc, acc_sc = refs
    else:
        q_ref, k_ref, v_ref, o_ref, m_sc, l_sc, acc_sc = refs
        mask_ref = None

    H = num_heads
    qi = pl.program_id(1)
    kv = pl.program_id(2)

    @pl.when(kv == 0)
    def _():
        m_sc[...] = jnp.full_like(m_sc, -1e30)
        l_sc[...] = jnp.zeros_like(l_sc)
        acc_sc[...] = jnp.zeros_like(acc_sc)

    def process_block():
        q = q_ref[0].astype(jnp.float32) * scale          # (tq, D) f32, scale folded in f32
        k = k_ref[0].astype(jnp.float32)                  # (tkv, D)
        v = v_ref[0].astype(jnp.float32)                  # (tkv, D)
        D = q.shape[-1]
        Dh = D // H

        bias = jnp.zeros((1, tkv), jnp.float32)
        if mask_ref is not None:                          # source padding: 0 valid, -1e9 pad
            bias = (mask_ref[0].astype(jnp.float32) - 1.0) * 1e9
        if causal:
            row = jax.lax.broadcasted_iota(jnp.int32, (tq, tkv), 0) + qi * tq
            col = jax.lax.broadcasted_iota(jnp.int32, (tq, tkv), 1) + kv * tkv
            bias = bias + jnp.where(col <= row, 0.0, -1e9)

        # static unroll over heads: per-head lane slices, no XLA transposes, one
        # (tq, tkv) score block live at a time.
        for h in range(H):
            sl = slice(h * Dh, (h + 1) * Dh)
            s = jnp.dot(q[:, sl], k[:, sl].T,
                        preferred_element_type=jnp.float32) + bias       # (tq, tkv)
            m_old = m_sc[:, h:h + 1]
            m_new = jnp.maximum(m_old, jnp.max(s, axis=-1, keepdims=True))
            alpha = jnp.exp(m_old - m_new)
            p = jnp.exp(s - m_new)
            l_sc[:, h:h + 1] = alpha * l_sc[:, h:h + 1] + jnp.sum(p, axis=-1, keepdims=True)
            acc_sc[:, sl] = alpha * acc_sc[:, sl] + jnp.dot(
                p, v[:, sl], preferred_element_type=jnp.float32)
            m_sc[:, h:h + 1] = m_new

    if causal:
        # skip KV blocks that lie entirely in the masked future of this q tile
        pl.when(kv * tkv <= qi * tq + (tq - 1))(process_block)
    else:
        process_block()

    @pl.when(kv == pl.num_programs(2) - 1)
    def _():
        D = acc_sc.shape[-1]
        Dh = D // H
        parts = [acc_sc[:, h * Dh:(h + 1) * Dh] / l_sc[:, h:h + 1] for h in range(H)]
        o_ref[0] = jnp.concatenate(parts, axis=-1).astype(o_ref.dtype)   # lane-dense (tq, D)


def flash_mha(q, k, v, *, d_model, num_heads, q_blk=0, k_blk=0, v_blk=0,
              mask=None, causal=False, tq_target=256, tkv_target=256):
    """Flash-style MHA over head-packed, lane-dense activations.

    q: (B, T, nq*D), k/v: (B, S, nk*D).  *_blk selects which D-wide lane block inside
    the packed array holds that tensor, so fused QKV / KV projection outputs feed the
    kernel directly (no XLA split/transpose).  mask: (B, 1, S) float {0,1} or None.
    Returns (B, T, D) bf16 with heads re-merged on the lane dim.
    """
    B, T, _ = q.shape
    S = k.shape[1]
    D, H = d_model, num_heads
    scale = 1.0 / float(D // H) ** 0.5
    tq = _tile(T, tq_target)
    tkv = _tile(S, tkv_target)
    grid = (B, T // tq, S // tkv)

    in_specs = [
        pl.BlockSpec((1, tq, D), lambda b, i, j, c=q_blk: (b, i, c)),
        pl.BlockSpec((1, tkv, D), lambda b, i, j, c=k_blk: (b, j, c)),
        pl.BlockSpec((1, tkv, D), lambda b, i, j, c=v_blk: (b, j, c)),
    ]
    args = [q, k, v]
    if mask is not None:
        in_specs.append(pl.BlockSpec((1, 1, tkv), lambda b, i, j: (b, 0, j)))
        args.append(mask)

    return pl.pallas_call(
        functools.partial(_flash_mha_kernel, num_heads=H, scale=scale, causal=causal,
                          has_mask=mask is not None, tq=tq, tkv=tkv),
        out_shape=jax.ShapeDtypeStruct((B, T, D), q.dtype),
        grid=grid,
        in_specs=in_specs,
        out_specs=pl.BlockSpec((1, tq, D), lambda b, i, j: (b, i, 0)),
        scratch_shapes=[pltpu.VMEM((tq, H), jnp.float32),     # running max  (per head)
                        pltpu.VMEM((tq, H), jnp.float32),     # running sum  (per head)
                        pltpu.VMEM((tq, D), jnp.float32)],    # output accumulator
        compiler_params=pltpu.CompilerParams(
            dimension_semantics=("parallel", "parallel", "arbitrary"),
            vmem_limit_bytes=_VMEM_LIMIT),
    )(*args)


# ----------------------------- attention bridge -----------------------------

def _bridge_kernel(*refs, return_alphas):
    if return_alphas:
        h_ref, mask_ref, w1_ref, w2_ref, m_ref, a_ref = refs
    else:
        h_ref, mask_ref, w1_ref, w2_ref, m_ref = refs
        a_ref = None
    # Lin et al. structured self-attention bridge (fixed-length):
    # A = softmax(W2^T tanh(W1^T H^T)) masked over padded src positions; M = A H
    h = h_ref[0].astype(jnp.float32)                                    # (S, D)
    bias = (mask_ref[0].astype(jnp.float32) - 1.0) * 1e9                # (1, S)
    t = jnp.tanh(jnp.dot(h, w1_ref[...].astype(jnp.float32),
                         preferred_element_type=jnp.float32))           # (S, DA)
    scores = jnp.dot(t, w2_ref[...].astype(jnp.float32),
                     preferred_element_type=jnp.float32)                # (S, R)
    scores = scores.T + bias                                            # (R, S)
    mx = jnp.max(scores, axis=-1, keepdims=True)
    p = jnp.exp(scores - mx)
    p = p / jnp.sum(p, axis=-1, keepdims=True)
    if a_ref is not None:
        a_ref[0] = p.astype(a_ref.dtype)
    m_ref[0] = jnp.dot(p, h, preferred_element_type=jnp.float32).astype(m_ref.dtype)


def attention_bridge_forward(p, enc_out, mask_f, return_alphas=False):
    """enc_out: (B,S,D) bf16, mask_f: (B,1,S) f32 -> context (B,R,D) bf16 (+alphas if asked).

    TODO(synk): for very long S, tile this kernel over S (two-pass or running softmax)."""
    B, S, D = enc_out.shape
    DA = p["w1"].shape[1]
    R = p["w2"].shape[1]
    out_shapes = [jax.ShapeDtypeStruct((B, R, D), enc_out.dtype)]
    out_specs = [pl.BlockSpec((1, R, D), lambda b: (b, 0, 0))]
    if return_alphas:
        out_shapes.append(jax.ShapeDtypeStruct((B, R, S), jnp.float32))
        out_specs.append(pl.BlockSpec((1, R, S), lambda b: (b, 0, 0)))
    out = pl.pallas_call(
        functools.partial(_bridge_kernel, return_alphas=return_alphas),
        out_shape=tuple(out_shapes) if return_alphas else out_shapes[0],
        grid=(B,),
        in_specs=[
            pl.BlockSpec((1, S, D), lambda b: (b, 0, 0)),
            pl.BlockSpec((1, 1, S), lambda b: (b, 0, 0)),
            pl.BlockSpec((D, DA), lambda b: (0, 0)),
            pl.BlockSpec((DA, R), lambda b: (0, 0)),
        ],
        out_specs=tuple(out_specs) if return_alphas else out_specs[0],
        compiler_params=pltpu.CompilerParams(
            dimension_semantics=("parallel",),
            vmem_limit_bytes=_VMEM_LIMIT),
    )(enc_out, mask_f, p["w1"], p["w2"])
    if return_alphas:
        return out[0], out[1]
    return out, None


# ----------------------------- transformer blocks (glue) -----------------------------

def self_attention_block(x_ln, h, p, H, mask=None, causal=False, ln=None):
    """Pre-LN self-attention: fused QKV proj -> flash MHA (in-kernel head split/merge)
    -> out-proj with fused residual add (and optionally the next LayerNorm)."""
    B, T, D = x_ln.shape
    qkv = linear(x_ln.reshape(B * T, D), p["wqkv"], p["bqkv"]).reshape(B, T, 3 * D)
    o = flash_mha(qkv, qkv, qkv, d_model=D, num_heads=H,
                  q_blk=0, k_blk=1, v_blk=2, mask=mask, causal=causal)   # (B, T, D)
    return linear(o.reshape(B * T, D), p["wo"], p["bo"],
                  residual=h.reshape(B * T, D), ln=ln)


def cross_attention_block(x_ln, h, context, p, H, mask=None, ln=None):
    B, T, D = x_ln.shape
    S = context.shape[1]
    q = linear(x_ln.reshape(B * T, D), p["wq"], p["bq"]).reshape(B, T, D)
    kv = linear(context.reshape(B * S, D), p["wkv"], p["bkv"]).reshape(B, S, 2 * D)
    o = flash_mha(q, kv, kv, d_model=D, num_heads=H,
                  q_blk=0, k_blk=0, v_blk=1, mask=mask)
    return linear(o.reshape(B * T, D), p["wo"], p["bo"],
                  residual=h.reshape(B * T, D), ln=ln)


def ff_block(x_ln2d, h2d, p, ln=None, keep_stream=True):
    f = linear(x_ln2d, p["ff1_w"], p["ff1_b"], activation="relu")
    return linear(f, p["ff2_w"], p["ff2_b"], residual=h2d,
                  ln=ln, keep_stream=keep_stream)


def encoder_forward(p, src_tokens, mask_f, H):
    B, S = src_tokens.shape
    D = p["emb"].shape[1]
    h0 = jnp.take(p["emb"], src_tokens, axis=0)            # (B, S, D) embedding gather (XLA glue)
    x0 = layer_norm(h0.reshape(B * S, D), p["ln1_g"], p["ln1_b"]).reshape(B, S, D)
    # self-attention; the pre-FF LayerNorm is fused into the out-proj epilogue
    h1, x1 = self_attention_block(x0, h0, p["attn"], H, mask=mask_f,
                                  ln=(p["ln2_g"], p["ln2_b"]))
    # feed-forward; return_embeddings=True final LayerNorm fused into FF2
    enc = ff_block(x1, h1, p, ln=(p["lnf_g"], p["lnf_b"]), keep_stream=False)
    return enc.reshape(B, S, D)


def decoder_forward(p, tgt_tokens, context, context_mask, H):
    B, T = tgt_tokens.shape
    D = p["emb"].shape[1]
    h0 = jnp.take(p["emb"], tgt_tokens, axis=0)            # (B, T, D)
    x0 = layer_norm(h0.reshape(B * T, D), p["ln1_g"], p["ln1_b"]).reshape(B, T, D)
    # causal self-attention; pre-cross-attn LayerNorm fused into out-proj
    # TODO(synk): target-side padding rows are not masked (as before); downstream loss must mask them.
    h1, x1 = self_attention_block(x0, h0, p["self_attn"], H, causal=True,
                                  ln=(p["ln2_g"], p["ln2_b"]))
    # cross-attention over the fixed-length bridge context; pre-FF LayerNorm fused
    h2, x2 = cross_attention_block(x1.reshape(B, T, D), h1.reshape(B, T, D),
                                   context, p["cross_attn"], H, mask=context_mask,
                                   ln=(p["ln3_g"], p["ln3_b"]))
    # feed-forward; final LayerNorm fused into FF2 (only the normalized stream is kept)
    dec2d = ff_block(x2, h2, p, ln=(p["lnf_g"], p["lnf_b"]), keep_stream=False)
    # return_logits_and_embeddings=True -> (logits, embeddings); logits in f32
    logits = linear(dec2d, p["logit_w"], p["logit_b"],
                    out_dtype=jnp.float32).reshape(B, T, -1)
    return logits, dec2d.reshape(B, T, D)


def nmt_forward(params, src, decoder_input, src_mask, metadata=None):
    """NMTModel.forward: (src, decoder_input, src_mask) -> (logits, decoder_output)."""
    # TODO(synk): StackXcoder.activate(task_id, adapter_ids) is task/adapter routing
    # (module selection, no tensor math); a single active encoder/decoder is assumed.
    H = params["heads"]
    B, S = src.shape
    mask_f = src_mask.astype(jnp.float32).reshape(B, 1, S)   # tiny; bias built in-kernel
    enc_out = encoder_forward(params["encoder"], src, mask_f, H)
    context, _alphas = attention_bridge_forward(params["bridge"], enc_out, mask_f,
                                                return_alphas=False)
    # attention_bridge.is_fixed_length == True -> src_mask dropped for the decoder
    logits, dec_out = decoder_forward(params["decoder"], decoder_input, context, None, H)
    return logits, dec_out


# ----------------------------- params -----------------------------

def init_params(key, vocab, D, H, FFN, DA, R):
    keys = iter(jax.random.split(key, 64))
    W = jnp.bfloat16   # matmul weights / embeddings stored bf16 (halved HBM traffic)

    def nrm(shape, scale=0.02):
        return (jax.random.normal(next(keys), shape, jnp.float32) * scale).astype(W)

    def self_attn_params():
        return {"wqkv": nrm((D, 3 * D)), "bqkv": jnp.zeros((3 * D,), jnp.float32),
                "wo": nrm((D, D)), "bo": jnp.zeros((D,), jnp.float32)}

    def cross_attn_params():
        return {"wq": nrm((D, D)), "bq": jnp.zeros((D,), jnp.float32),
                "wkv": nrm((D, 2 * D)), "bkv": jnp.zeros((2 * D,), jnp.float32),
                "wo": nrm((D, D)), "bo": jnp.zeros((D,), jnp.float32)}

    def ln():
        return jnp.ones((D,), jnp.float32), jnp.zeros((D,), jnp.float32)

    e_ln1g, e_ln1b = ln(); e_ln2g, e_ln2b = ln(); e_lnfg, e_lnfb = ln()
    enc = {"emb": nrm((vocab, D), 1.0),
           "ln1_g": e_ln1g, "ln1_b": e_ln1b, "attn": self_attn_params(),
           "ln2_g": e_ln2g, "ln2_b": e_ln2b,
           "ff1_w": nrm((D, FFN)), "ff1_b": jnp.zeros((FFN,), jnp.float32),
           "ff2_w": nrm((FFN, D)), "ff2_b": jnp.zeros((D,), jnp.float32),
           "lnf_g": e_lnfg, "lnf_b": e_lnfb}

    bridge = {"w1": nrm((D, DA), 0.1), "w2": nrm((DA, R), 0.1)}

    d_ln1g, d_ln1b = ln(); d_ln2g, d_ln2b = ln(); d_ln3g, d_ln3b = ln(); d_lnfg, d_lnfb = ln()
    dec = {"emb": nrm((vocab, D), 1.0),
           "ln1_g": d_ln1g, "ln1_b": d_ln1b, "self_attn": self_attn_params(),
           "ln2_g": d_ln2g, "ln2_b": d_ln2b, "cross_attn": cross_attn_params(),
           "ln3_g": d_ln3g, "ln3_b": d_ln3b,
           "ff1_w": nrm((D, FFN)), "ff1_b": jnp.zeros((FFN,), jnp.float32),
           "ff2_w": nrm((FFN, D)), "ff2_b": jnp.zeros((D,), jnp.float32),
           "lnf_g": d_lnfg, "lnf_b": d_lnfb,
           "logit_w": nrm((D, vocab)), "logit_b": jnp.zeros((vocab,), jnp.float32)}

    return {"encoder": enc, "bridge": bridge, "decoder": dec, "heads": H}


# ----------------------------- main -----------------------------

if __name__ == "__main__":
    # Small but lane-aligned shapes: D a multiple of 128 keeps every packed-head
    # lane block (q/k/v within the fused QKV output) Mosaic-friendly.
    B, S_SRC, T_TGT = 2, 8, 8
    D, H, FFN, VOCAB = 128, 4, 256, 256
    DA, R = 64, 8  # attention-bridge hidden size / fixed output length

    root = jax.random.PRNGKey(0)
    k_params, k_src, k_tgt = jax.random.split(root, 3)
    params = init_params(k_params, VOCAB, D, H, FFN, DA, R)

    src = jax.random.randint(k_src, (B, S_SRC), 0, VOCAB, dtype=jnp.int32)
    decoder_input = jax.random.randint(k_tgt, (B, T_TGT), 0, VOCAB, dtype=jnp.int32)
    lengths = jnp.array([S_SRC, 5], dtype=jnp.int32)
    src_mask = jnp.arange(S_SRC)[None, :] < lengths[:, None]   # (B, S) bool, True = valid

    logits, dec_out = nmt_forward(params, src, decoder_input, src_mask)
    jax.block_until_ready((logits, dec_out))

    assert logits.shape == (B, T_TGT, VOCAB), logits.shape
    assert dec_out.shape == (B, T_TGT, D), dec_out.shape
    assert bool(jnp.all(jnp.isfinite(logits)))
    assert bool(jnp.all(jnp.isfinite(dec_out.astype(jnp.float32))))
    print("KERNEL_OK")
</pallas_src>

<mosaic_0001>
module attributes {stable_mosaic.version = 11 : i64} {
  func.func @_layernorm_kernel(%arg0: i32, %arg1: memref<16x128xbf16, #tpu.memory_space<vmem>>, %arg2: memref<1x128xf32, #tpu.memory_space<vmem>>, %arg3: memref<1x128xf32, #tpu.memory_space<vmem>>, %arg4: memref<16x128xbf16, #tpu.memory_space<vmem>>) attributes {dimension_semantics = [#tpu.dimension_semantics<parallel>], iteration_bounds = array<i64: 1>, scalar_prefetch = 0 : i64, scratch_operands = 0 : i64, tpu.core_type = #tpu.core_type<tc>, window_params = [{transform_indices = @transform_0, window_bounds = array<i64: 16, 128>}, {pipeline_mode = #tpu.pipeline_mode<synchronous>, transform_indices = @transform_1, window_bounds = array<i64: 1, 128>}, {pipeline_mode = #tpu.pipeline_mode<synchronous>, transform_indices = @transform_2, window_bounds = array<i64: 1, 128>}, {transform_indices = @transform_3, window_bounds = array<i64: 16, 128>}]} {
    %c0 = arith.constant 0 : index
    %c0_0 = arith.constant 0 : index
    %0 = vector.load %arg1[%c0, %c0_0] : memref<16x128xbf16, #tpu.memory_space<vmem>>, vector<16x128xbf16>
    %1 = arith.extf %0 : vector<16x128xbf16> to vector<16x128xf32>
    %cst = arith.constant dense<0.000000e+00> : vector<16xf32>
    %2 = vector.multi_reduction <add>, %1, %cst [1] : vector<16x128xf32> to vector<16xf32>
    %3 = vector.shape_cast %2 : vector<16xf32> to vector<16x1xf32>
    %cst_1 = arith.constant 1.280000e+02 : f32
    %4 = vector.broadcast %cst_1 : f32 to vector<16x1xf32>
    %5 = arith.divf %3, %4 : vector<16x1xf32>
    %6 = vector.broadcast %5 : vector<16x1xf32> to vector<16x128xf32>
    %7 = arith.subf %1, %6 : vector<16x128xf32>
    %8 = arith.mulf %7, %7 : vector<16x128xf32>
    %cst_2 = arith.constant dense<0.000000e+00> : vector<16xf32>
    %9 = vector.multi_reduction <add>, %8, %cst_2 [1] : vector<16x128xf32> to vector<16xf32>
    %10 = vector.shape_cast %9 : vector<16xf32> to vector<16x1xf32>
    %cst_3 = arith.constant 1.280000e+02 : f32
    %11 = vector.broadcast %cst_3 : f32 to vector<16x1xf32>
    %12 = arith.divf %10, %11 : vector<16x1xf32>
    %13 = vector.broadcast %5 : vector<16x1xf32> to vector<16x128xf32>
    %14 = arith.subf %1, %13 : vector<16x128xf32>
    %cst_4 = arith.constant 9.99999974E-6 : f32
    %15 = vector.broadcast %cst_4 : f32 to vector<16x1xf32>
    %16 = arith.addf %12, %15 : vector<16x1xf32>
    %17 = math.rsqrt %16 : vector<16x1xf32>
    %18 = vector.broadcast %17 : vector<16x1xf32> to vector<16x128xf32>
    %19 = arith.mulf %14, %18 : vector<16x128xf32>
    %c0_5 = arith.constant 0 : index
    %c0_6 = arith.constant 0 : index
    %20 = vector.load %arg2[%c0_5, %c0_6] : memref<1x128xf32, #tpu.memory_space<vmem>>, vector<1x128xf32>
    %21 = vector.broadcast %20 : vector<1x128xf32> to vector<16x128xf32>
    %22 = arith.mulf %19, %21 : vector<16x128xf32>
    %c0_7 = arith.constant 0 : index
    %c0_8 = arith.constant 0 : index
    %23 = vector.load %arg3[%c0_7, %c0_8] : memref<1x128xf32, #tpu.memory_space<vmem>>, vector<1x128xf32>
    %24 = vector.broadcast %23 : vector<1x128xf32> to vector<16x128xf32>
    %25 = arith.addf %22, %24 : vector<16x128xf32>
    %26 = arith.truncf %25 : vector<16x128xf32> to vector<16x128xbf16>
    %c0_9 = arith.constant 0 : index
    %c0_10 = arith.constant 0 : index
    %27 = vector.load %arg4[%c0_9, %c0_10] : memref<16x128xbf16, #tpu.memory_space<vmem>>, vector<16x128xbf16>
    tpu.vector_store %arg4[%c0_9, %c0_10], %26 {strides = array<i32>} : memref<16x128xbf16, #tpu.memory_space<vmem>>, vector<16x128xbf16>,
    return
  }
  func.func @transform_0(%arg0: i32) -> (i32, i32) {
    %c0_i32 = arith.constant 0 : i32
    %c0_i32_0 = arith.constant 0 : i32
    return %arg0, %c0_i32 : i32, i32
  }
  func.func @transform_1(%arg0: i32) -> (i32, i32) {
    %c0_i32 = arith.constant 0 : i32
    %c0_i32_0 = arith.constant 0 : i32
    %c0_i32_1 = arith.constant 0 : i32
    return %c0_i32, %c0_i32_0 : i32, i32
  }
  func.func @transform_2(%arg0: i32) -> (i32, i32) {
    %c0_i32 = arith.constant 0 : i32
    %c0_i32_0 = arith.constant 0 : i32
    %c0_i32_1 = arith.constant 0 : i32
    return %c0_i32, %c0_i32_0 : i32, i32
  }
  func.func @transform_3(%arg0: i32) -> (i32, i32) {
    %c0_i32 = arith.constant 0 : i32
    %c0_i32_0 = arith.constant 0 : i32
    return %arg0, %c0_i32 : i32, i32
  }
}

</mosaic_0001>

<bundles_post_ra>
// kernel: tpu_custom_call.1
= control target key start
LH: loop header
LB: loop body
LE: loop exit
PB: predicated region body
PF: predicated region fallthrough
CT: control target
= control target key end

     0   :  { %8 = vsyncpa [#allocation3], 0  ;;  %s232_s0 = inlined_call_operand.hbm [shape: bf16[16,128], index: 0, kind: input, shape index: {}]   ;;  %s233_s1 = inlined_call_operand.vmem [shape: f32[1,128], index: 1, kind: input, shape index: {}]   ;;  %s234_s2 = inlined_call_operand.vmem [shape: f32[1,128], index: 2, kind: input, shape index: {}]   ;;  %s235_s3 = inlined_call_operand.hbm [shape: bf16[16,128], index: 3, kind: output, shape index: {}]  }
   0x1   :  { %9 = vsyncpa [#allocation4], 0  ;;  %s172_s12 = smov [#allocation2]   ;;  %s124_s16 = scalar_lea.hbm %s232_s0, 128 }
   0x2   :  { %s15_s13 = sshll.u32 %s172_s12, 4  ;;  %p125_p0 = scmp.ne.s32.totalorder %s232_s0, %s124_s16  ;;  %s16_s13 = int_to_ptr.vmem [resolvable:$true] %s15_s13 }
   0x3   :  { %p128_p1 = scmp.lt.u32.totalorder %s124_s16, %s232_s0 }
   0x5   :  { %p130_p2 = pnand %p128_p1, %p125_p0 }
   0x7   :  { %133 = shalt.err (!%p130_p2)
}
   0x8   :  { %s134_s21 = scalar_lea.vmem %s16_s13, 128  ;;  %p139_p4 = scmp.lt.s32.totalorder %s16_s13, %s16_s13 }
   0x9   :  { %p135_p3 = scmp.ne.s32.totalorder %s16_s13, %s134_s21  ;;  %p140_p5 = scmp.lt.s32.totalorder %s134_s21, %s134_s21 }
   0xb   :  { %p141_p6 = por %p140_p5, %p139_p4 }
   0xd   :  { %p142_p7 = pnand %p141_p6, %p135_p3 }
   0xf   :  { %145 = shalt.err (!%p142_p7)
}
  0x10   :  { %s173_s22 = smov 64   ;;  %s174_s23 = smov 4  }
  0x11   :  { %21 = dma.hbm_to_vmem [thread:$0]  %s232_s0, 128, %s16_s13, [#allocation3], %s173_s22, %s173_s22, %s174_s23  }
  0x12   :  { %168 = dma.done.wait [#allocation3], 128  }
  0x13   :  { %169 = vsyncadd [#allocation3], 4294967168  ;;  %v108_v0 = vld [vmem:[#allocation2] sm:$0xff]   ;;  %s175_s29 = smov [#allocation5]  }
  0x14   :  { %v109_v1 = vunpack.c.l.bf16 %v108_v0  ;;  %v110_v2 = vunpack.c.h.bf16 %v108_v0  ;;  %v101_v19 = vld [vmem:[%s233_s1] ss:$0 sm:$0xff]  ;;  %s89_s30 = sshll.u32 %s175_s29, 4  ;;  %s90_s30 = int_to_ptr.vmem [resolvable:$true] %s89_s30 }
  0x15   :  { %v102_v23 = vld [vmem:[%s234_s2] ss:$0 sm:$0xff]  ;;  %s146_s4 = scalar_lea.vmem %s90_s30, 128  ;;  %p151_p9 = scmp.lt.s32.totalorder %s90_s30, %s90_s30 }
  0x16   :  { %33 = vadd.xlane.f32.xlu0 %v109_v1  ;;  %p147_p8 = scmp.ne.s32.totalorder %s90_s30, %s146_s4  ;;  %p152_p10 = scmp.lt.s32.totalorder %s146_s4, %s146_s4 }
  0x18   :  { %p153_p11 = por %p152_p10, %p151_p9 }
  0x1a   :  { %35 = vadd.xlane.f32.xlu0 %v110_v2  ;;  %p154_p12 = pnand %p153_p11, %p147_p8 }
  0xa3   :  { %v34_v3 = vpop.xlane.xlu0 %33 }
  0xa4   :  { %v38_v4 = vmul.f32 0.0078125, %v34_v3 }
  0xa6   :  { %v40_v5 = vsub.f32 %v109_v1, %v38_v4 }
  0xa7   :  { %v36_v6 = vpop.xlane.xlu0 %35 }
  0xa8   :  { %v39_v7 = vmul.f32 0.0078125, %v36_v6  ;;  %v42_v8 = vmul.f32 %v40_v5, %v40_v5 }
  0xaa   :  { %v41_v9 = vsub.f32 %v110_v2, %v39_v7  ;;  %44 = vadd.xlane.f32.xlu1 %v42_v8 }
  0xac   :  { %v43_v10 = vmul.f32 %v41_v9, %v41_v9 }
  0xae   :  { %46 = vadd.xlane.f32.xlu1 %v43_v10 }
 0x137   :  { %v45_v11 = vpop.xlane.xlu1 %44 }
 0x138   :  { %v48_v12 = vmul.f32 0.0078125, %v45_v11 }
 0x13a   :  { %v50_v13 = vadd.f32 1e-05, %v48_v12 }
 0x13b   :  { %v47_v14 = vpop.xlane.xlu1 %46 }
 0x13c   :  { %120 = vrsqrt.f32 %v50_v13  ;;  %v49_v15 = vmul.f32 0.0078125, %v47_v14 }
 0x13e   :  { %v51_v16 = vadd.f32 1e-05, %v49_v15 }
 0x140   :  { %122 = vrsqrt.f32 %v51_v16 }
 0x146   :  { %v121_v17 = vpop.eup %120 }
 0x147   :  { %v54_v18 = vmul.f32 %v121_v17, %v40_v5 }
 0x149   :  { %v63_v22 = vmul.f32 %v101_v19, %v54_v18 }
 0x14a   :  { %v123_v20 = vpop.eup %122 }
 0x14b   :  { %v55_v21 = vmul.f32 %v123_v20, %v41_v9  ;;  %v72_v25 = vadd.f32 %v102_v23, %v63_v22 }
 0x14d   :  { %v64_v24 = vmul.f32 %v101_v19, %v55_v21 }
 0x14f   :  { %v73_v26 = vadd.f32 %v102_v23, %v64_v24 }
 0x151   :  { %v114_v27 = vpack.c.bf16 %v73_v26, %v72_v25 }
 0x153   :  { %115 = vst [vmem:[#allocation5] sm:$0xff] %v114_v27  }
 0x154   :  { %157 = shalt.err (!%p154_p12)
}
 0x155   :  { %s158_s6 = scalar_lea.hbm %s235_s3, 128 }
 0x156   :  { %p159_p13 = scmp.ne.s32.totalorder %s235_s3, %s158_s6  ;;  %p162_p0 = scmp.lt.u32.totalorder %s158_s6, %s235_s3 }
 0x158   :  { %p164_p1 = pnand %p162_p0, %p159_p13 }
 0x15a   :  { %167 = shalt.err (!%p164_p1)
}
 0x15b   :  { %95 = dma.vmem_to_hbm [thread:$0]  %s90_s30, 128, %s235_s3, [#allocation4], %s173_s22, %s173_s22, %s174_s23  }
 0x15c   :  { %170 = dma.done.wait [#allocation4], 128  }
 0x15d   :  { %171 = vsyncadd [#allocation4], 4294967168 }
 0x15e   :  { %99 = vsyncpa [#allocation3], 1 }
 0x15f   :  { %100 = vsyncpa [#allocation4], 1 }

</bundles_post_ra>
